<compile_context>
chip_gen: v5e
topology: v5e:2x2
jax: 0.10.0
libtpu: 0.0.40
codegen_flags: <defaults>
</compile_context>

<pallas_src>
import jax
import jax.numpy as jnp
from jax.experimental import pallas as pl
from jax.experimental.pallas import tpu as pltpu

EPS = 1e-5

# Row layout of the packed per-feature vector tensor (8, N).
_B1, _G1, _BE1, _B2, _G2, _BE2, _BP = 0, 1, 2, 3, 4, 5, 6


# ----------------------------- kernel helpers -------------------------------- #
def _bn_train(h, gamma, beta, inv_b, mask):
    """Train-mode BatchNorm1d over a (possibly zero-padded) batch axis.

    Stats divide by the true batch size (`inv_b`); `mask` (Bp,1) zeroes padded
    rows out of the sums so mean/var stay exact.  gamma is folded into the
    rsqrt scale -> one FMA normalization pass, two XLU reductions.
    """
    hm = h if mask is None else jnp.where(mask, h, 0.0)
    mean = jnp.sum(hm, axis=0, keepdims=True) * inv_b
    hc = h - mean                                   # reused for var AND normalize
    hcm = hc if mask is None else jnp.where(mask, hc, 0.0)
    var = jnp.sum(hcm * hcm, axis=0, keepdims=True) * inv_b
    scale = gamma * jax.lax.rsqrt(var + jnp.float32(EPS))
    return hc * scale + beta


def _batch_mask(true_b, padded_b):
    if padded_b == true_b:
        return None
    rows = jax.lax.broadcasted_iota(jnp.int32, (padded_b, 1), 0)
    return rows < true_b


# ----------------------------- kernel bodies -------------------------------- #
def _make_fused_kernel(true_b, padded_b):
    inv_b = 1.0 / float(true_b)

    def kernel(x_ref, t_ref, w1_ref, w2_ref, wp_ref, vec_ref, o_ref):
        mask = _batch_mask(true_b, padded_b)
        vec = vec_ref[...]                          # (8, Np) fp32, packed vectors

        # dense1 + ReLU + BN1
        h = jnp.dot(x_ref[...], w1_ref[...],
                    preferred_element_type=jnp.float32) + vec[_B1:_B1 + 1]
        h = jnp.maximum(h, 0.0)
        h = _bn_train(h, vec[_G1:_G1 + 1], vec[_BE1:_BE1 + 1], inv_b, mask)

        # positional-embedding MLP add
        h = h + jnp.dot(t_ref[...], wp_ref[...],
                        preferred_element_type=jnp.float32) + vec[_BP:_BP + 1]

        # dense2 + ReLU + BN2
        h = jnp.dot(h.astype(w2_ref.dtype), w2_ref[...],
                    preferred_element_type=jnp.float32) + vec[_B2:_B2 + 1]
        h = jnp.maximum(h, 0.0)
        h = _bn_train(h, vec[_G2:_G2 + 1], vec[_BE2:_BE2 + 1], inv_b, mask)

        o_ref[...] = h.astype(o_ref.dtype)

    return kernel


def _make_layer1_kernel(true_b, padded_b):
    inv_b = 1.0 / float(true_b)

    def kernel(x_ref, t_ref, w1_ref, wp_ref, vec_ref, o_ref):
        """BN1(ReLU(x@W1+b1)) + t@Wp+bp for one tile of output features."""
        mask = _batch_mask(true_b, padded_b)
        vec = vec_ref[...]
        h = jnp.dot(x_ref[...], w1_ref[...],
                    preferred_element_type=jnp.float32) + vec[_B1:_B1 + 1]
        h = jnp.maximum(h, 0.0)
        h = _bn_train(h, vec[_G1:_G1 + 1], vec[_BE1:_BE1 + 1], inv_b, mask)
        h = h + jnp.dot(t_ref[...], wp_ref[...],
                        preferred_element_type=jnp.float32) + vec[_BP:_BP + 1]
        o_ref[...] = h.astype(o_ref.dtype)

    return kernel


def _make_layer2_kernel(true_b, padded_b):
    inv_b = 1.0 / float(true_b)

    def kernel(h_ref, w2_ref, vec_ref, o_ref):
        """BN2(ReLU(h@W2+b2)) for one tile of output features (full h as K)."""
        mask = _batch_mask(true_b, padded_b)
        vec = vec_ref[...]
        h = jnp.dot(h_ref[...], w2_ref[...],
                    preferred_element_type=jnp.float32) + vec[_B2:_B2 + 1]
        h = jnp.maximum(h, 0.0)
        h = _bn_train(h, vec[_G2:_G2 + 1], vec[_BE2:_BE2 + 1], inv_b, mask)
        o_ref[...] = h.astype(o_ref.dtype)

    return kernel


# ------------------------------- wrapper helpers ----------------------------- #
def _round_up(n, m):
    return ((n + m - 1) // m) * m


def _pad2(a, rows, cols):
    return jnp.pad(a, ((0, rows - a.shape[0]), (0, cols - a.shape[1])))


def _vmem_capacity_bytes():
    """Per-core VMEM capacity; conservative 64 MiB (v7x floor) if query fails."""
    try:
        cap = int(pltpu.get_tpu_info().vmem_capacity_bytes)
        if cap > 0:
            return cap
    except Exception:
        pass
    return 64 << 20


def _tensorcores_per_device():
    """Best-effort TC-per-device count (v7x and v4/v5p megacore have 2)."""
    try:
        kind = jax.devices()[0].device_kind.lower()
    except Exception:
        return 1
    return 2 if any(tag in kind for tag in ("v7", "v4", "v5p")) else 1


def _fused_vmem_estimate(Bp, Kp, Pp, Np, isz):
    operands = (Bp * (Kp + Pp) * isz            # x, t
                + (Kp + Pp + Np) * Np * isz     # w1, wp, w2
                + 8 * Np * 4                    # packed per-feature vectors
                + Bp * Np * 4)                  # fp32 output
    intermediates = 4 * Bp * Np * 4             # live fp32 h copies (generous)
    return operands + intermediates


def _split_vmem_estimate(Bp, Kp, Pp, Nt, tn, isz, single_buf):
    cbuf = 1 if single_buf else 2               # buffers for constant-index blocks
    slack = 3 * Bp * tn * 4                     # fp32 compute intermediates
    l1 = (cbuf * Bp * (Kp + Pp) * isz           # x, t (constant blocks)
          + 2 * (Kp + Pp) * tn * isz            # w1, wp tiles (double-buffered)
          + 2 * 8 * tn * 4                      # vec tile
          + 2 * Bp * tn * isz                   # h1 output tile
          + slack)
    l2 = (cbuf * Bp * Nt * isz                  # full h1 (constant block)
          + 2 * Nt * tn * isz                   # w2 tile
          + 2 * 8 * tn * 4
          + 2 * Bp * tn * 4                     # fp32 output tile
          + slack)
    return max(l1, l2)


def _pick_tile(Np, fits):
    """Widest feature tile that fits the per-tile VMEM budget.

    Prefers >=256-wide tiles (full MXU width on v6e/v7x) and, among those,
    minimal over-padding of the 128-rounded feature width; 128 is the fallback
    (always divides Np, v5e-friendly).
    """
    best = None
    for tn in (2048, 1792, 1536, 1280, 1024, 768, 512, 256):
        if tn > Np or not fits(tn):
            continue
        key = (_round_up(Np, tn), -tn)          # least padding, then widest
        if best is None or key < best[0]:
            best = (key, tn)
    return best[1] if best is not None else 128


# ------------------------------- forward ------------------------------------ #
def dense_block_forward(x, t, params, *, matmul_dtype=jnp.bfloat16,
                        out_dtype=jnp.float32, force_split=False,
                        max_feature_tile=None):
    """DenseBlockClass forward (train-mode BatchNorm).

    x: (B, in_dim), t: (B, pos_emb_dim); params hold w1/w2/wp in [in, out] layout
    and (1, out_dim) vectors b1, g1, be1, b2, g2, be2, bp.

    Feature dims are zero-padded to multiples of 128; the batch is padded to a
    sublane-dense multiple (16 for bf16, 8 for fp32) with BN stats kept exact via
    row masking.  A fused single-call kernel is used when it fits the per-chip
    VMEM budget; otherwise (or on 2-TensorCore chips with >=2 feature tiles) the
    block is split into two feature-gridded pallas_calls ("parallel" semantics).
    The batch axis is never tiled, so BatchNorm statistics stay exact.
    """
    B, in_dim = x.shape
    pos_dim = t.shape[1]
    out_dim = params["w2"].shape[1]
    md = jnp.dtype(matmul_dtype)
    isz = md.itemsize

    Kp = _round_up(in_dim, 128)
    Pp = _round_up(pos_dim, 128)
    Np = _round_up(out_dim, 128)
    Bp = _round_up(B, 16 if isz < 4 else 8)

    xp = _pad2(x, Bp, Kp).astype(md)
    tp = _pad2(t, Bp, Pp).astype(md)
    w1 = _pad2(params["w1"], Kp, Np).astype(md)
    wp = _pad2(params["wp"], Pp, Np).astype(md)
    # Pack all per-feature vectors into one (8, Np) fp32 tensor (single DMA).
    vec = jnp.concatenate(
        [params["b1"], params["g1"], params["be1"],
         params["b2"], params["g2"], params["be2"],
         params["bp"], jnp.zeros_like(params["b1"])], axis=0).astype(jnp.float32)
    vec = _pad2(vec, 8, Np)

    # Per-generation VMEM budget: ~80% of the queried per-core capacity
    # (~51 MiB on v7x, ~102 MiB on v5e/v6e) so compiler scratch and the implicit
    # double buffers still have headroom.
    budget = int(_vmem_capacity_bytes() * 0.8)
    vmem_limit = budget
    n_tc = _tensorcores_per_device()

    prefer_split = (n_tc > 1) and (Np >= 512)   # >=2 feature tiles -> shard TCs
    fused_fits = _fused_vmem_estimate(Bp, Kp, Pp, Np, isz) <= budget
    use_fused = (not force_split) and (not prefer_split) and fused_fits

    if use_fused:
        w2 = _pad2(params["w2"], Np, Np).astype(md)
        out = pl.pallas_call(
            _make_fused_kernel(B, Bp),
            out_shape=jax.ShapeDtypeStruct((Bp, Np), out_dtype),
            in_specs=[pl.BlockSpec(memory_space=pltpu.MemorySpace.VMEM)] * 6,
            out_specs=pl.BlockSpec(memory_space=pltpu.MemorySpace.VMEM),
            compiler_params=pltpu.CompilerParams(vmem_limit_bytes=vmem_limit),
        )(xp, tp, w1, w2, wp, vec)
        return out[:B, :out_dim]

    # ---------------- split path: two feature-gridded pallas_calls ----------- #
    if max_feature_tile is not None:
        assert max_feature_tile % 128 == 0

    def fits(tn):
        if max_feature_tile is not None and tn > max_feature_tile:
            return False
        return _split_vmem_estimate(Bp, Kp, Pp, _round_up(Np, tn), tn, isz,
                                    single_buf=True) <= budget

    tn = _pick_tile(Np, fits)
    Nt = _round_up(Np, tn)                       # whole number of feature tiles
    w1s = _pad2(params["w1"], Kp, Nt).astype(md)
    wps = _pad2(params["wp"], Pp, Nt).astype(md)
    w2s = _pad2(params["w2"], Nt, Nt).astype(md)
    vecs = _pad2(vec, 8, Nt)
    grid = (Nt // tn,)
    cparams = pltpu.CompilerParams(
        dimension_semantics=("parallel",), vmem_limit_bytes=vmem_limit)

    def run(single_buf):
        # Blocks whose index never changes (x, t, full h1) are DMA'd once per core
        # (Pallas skips the copy when the block index repeats); single-buffering
        # them reclaims the otherwise wasted second VMEM buffer.
        def const_spec(shape):
            if single_buf:
                return pl.BlockSpec(shape, lambda j: (0, 0),
                                    pipeline_mode=pl.Buffered(1))
            return pl.BlockSpec(shape, lambda j: (0, 0))

        # Layer 1 (+ pos-emb add), gridded over output-feature tiles.
        h1 = pl.pallas_call(
            _make_layer1_kernel(B, Bp),
            out_shape=jax.ShapeDtypeStruct((Bp, Nt), md),
            grid=grid,
            in_specs=[
                const_spec((Bp, Kp)),
                const_spec((Bp, Pp)),
                pl.BlockSpec((Kp, tn), lambda j: (0, j)),
                pl.BlockSpec((Pp, tn), lambda j: (0, j)),
                pl.BlockSpec((8, tn), lambda j: (0, j)),
            ],
            out_specs=pl.BlockSpec((Bp, tn), lambda j: (0, j)),
            compiler_params=cparams,
        )(xp, tp, w1s, wps, vecs)

        # Layer 2, gridded over output-feature tiles (full h1 as the K dim).
        return pl.pallas_call(
            _make_layer2_kernel(B, Bp),
            out_shape=jax.ShapeDtypeStruct((Bp, Nt), out_dtype),
            grid=grid,
            in_specs=[
                const_spec((Bp, Nt)),
                pl.BlockSpec((Nt, tn), lambda j: (0, j)),
                pl.BlockSpec((8, tn), lambda j: (0, j)),
            ],
            out_specs=pl.BlockSpec((Bp, tn), lambda j: (0, j)),
            compiler_params=cparams,
        )(h1, w2s, vecs)

    try:
        out = run(single_buf=True)
    except Exception:
        # Fallback if single-buffered pipeline_mode is unsupported on this build.
        out = run(single_buf=False)
    return out[:B, :out_dim]


# ----------------------------- reference & params --------------------------- #
def dense_block_reference(x, t, p, matmul_dtype=jnp.float32):
    """Pure-JAX reference of the PyTorch forward (train-mode BatchNorm).
    `matmul_dtype` lets the reference mirror the kernel's bf16 MXU operands."""
    md = matmul_dtype
    dot = lambda a, w: jnp.dot(a.astype(md), w.astype(md),
                               preferred_element_type=jnp.float32)

    def bn(h, g, be):
        m = jnp.mean(h, axis=0, keepdims=True)
        v = jnp.mean((h - m) ** 2, axis=0, keepdims=True)
        return (h - m) * jax.lax.rsqrt(v + EPS) * g + be

    h = bn(jnp.maximum(dot(x, p["w1"]) + p["b1"], 0.0), p["g1"], p["be1"])
    h = h + dot(t, p["wp"]) + p["bp"]
    h = bn(jnp.maximum(dot(h, p["w2"]) + p["b2"], 0.0), p["g2"], p["be2"])
    return h


def make_params(key, in_dim, out_dim, pos_emb_dim):
    ks = jax.random.split(key, 8)

    def lin(k, fan_in, fan_out):
        bound = 1.0 / jnp.sqrt(fan_in)
        kw, kb = jax.random.split(k)
        w = jax.random.uniform(kw, (fan_in, fan_out), jnp.float32, -bound, bound)
        b = jax.random.uniform(kb, (1, fan_out), jnp.float32, -bound, bound)
        return w, b

    w1, b1 = lin(ks[0], in_dim, out_dim)
    w2, b2 = lin(ks[1], out_dim, out_dim)
    wp, bp = lin(ks[2], pos_emb_dim, out_dim)
    g1 = 1.0 + 0.1 * jax.random.normal(ks[3], (1, out_dim), jnp.float32)
    be1 = 0.1 * jax.random.normal(ks[4], (1, out_dim), jnp.float32)
    g2 = 1.0 + 0.1 * jax.random.normal(ks[5], (1, out_dim), jnp.float32)
    be2 = 0.1 * jax.random.normal(ks[6], (1, out_dim), jnp.float32)
    return dict(w1=w1, b1=b1, g1=g1, be1=be1,
                w2=w2, b2=b2, g2=g2, be2=be2,
                wp=wp, bp=bp)


if __name__ == "__main__":
    key = jax.random.PRNGKey(0)

    # --- Config 1: module defaults (in=10, out=5, pos=10), batch=8 -> fused path. ---
    in_dim, out_dim, pos_emb_dim, batch = 10, 5, 10, 8
    kx, kt, kp, key = jax.random.split(key, 4)
    x = jax.random.normal(kx, (batch, in_dim), jnp.float32)
    t = jax.random.normal(kt, (batch, pos_emb_dim), jnp.float32)
    params = make_params(kp, in_dim, out_dim, pos_emb_dim)

    # (a) fp32 matmul operands: strict semantic check vs the PyTorch-style reference.
    out_f32 = jax.block_until_ready(
        dense_block_forward(x, t, params, matmul_dtype=jnp.float32))
    ref_f32 = dense_block_reference(x, t, params, matmul_dtype=jnp.float32)
    assert out_f32.shape == (batch, out_dim)
    assert jnp.allclose(out_f32, ref_f32, atol=1e-4, rtol=1e-4), "fp32 path mismatch"

    # (b) default bf16 MXU-operand path (BN math fp32, batch padded to 16 w/ exact
    #     masked stats) vs a bf16-matched reference.
    out_bf16 = jax.block_until_ready(dense_block_forward(x, t, params))
    ref_bf16 = dense_block_reference(x, t, params, matmul_dtype=jnp.bfloat16)
    assert jnp.allclose(out_bf16, ref_bf16, atol=5e-3, rtol=5e-3), "bf16 path mismatch"

    # --- Config 2: wider features, forced onto the split path with two 256-wide
    #     feature tiles (exercises the gridded / feature-parallel kernels). ---
    in2, out2, pos2 = 10, 512, 10
    kx, kt, kp, key = jax.random.split(key, 4)
    x2 = jax.random.normal(kx, (batch, in2), jnp.float32)
    t2 = jax.random.normal(kt, (batch, pos2), jnp.float32)
    params2 = make_params(kp, in2, out2, pos2)
    out_g = jax.block_until_ready(
        dense_block_forward(x2, t2, params2, force_split=True, max_feature_tile=256))
    ref_g = dense_block_reference(x2, t2, params2, matmul_dtype=jnp.bfloat16)
    assert out_g.shape == (batch, out2)
    assert jnp.allclose(out_g, ref_g, atol=5e-3, rtol=5e-3), "gridded path mismatch"

    print("KERNEL_OK")
</pallas_src>

<mosaic_0001>
module attributes {stable_mosaic.version = 11 : i64} {
  func.func @kernel(%arg0: memref<8x128xf32, #tpu.memory_space<vmem>>, %arg1: memref<8x128xf32, #tpu.memory_space<vmem>>, %arg2: memref<128x128xf32, #tpu.memory_space<vmem>>, %arg3: memref<128x128xf32, #tpu.memory_space<vmem>>, %arg4: memref<128x128xf32, #tpu.memory_space<vmem>>, %arg5: memref<8x128xf32, #tpu.memory_space<vmem>>, %arg6: memref<8x128xf32, #tpu.memory_space<vmem>>) attributes {dimension_semantics = [], scalar_prefetch = 0 : i64, scratch_operands = 0 : i64, tpu.core_type = #tpu.core_type<tc>} {
    %c0 = arith.constant 0 : index
    %c0_0 = arith.constant 0 : index
    %0 = vector.load %arg5[%c0, %c0_0] : memref<8x128xf32, #tpu.memory_space<vmem>>, vector<8x128xf32>
    %c0_1 = arith.constant 0 : index
    %c0_2 = arith.constant 0 : index
    %1 = vector.load %arg0[%c0_1, %c0_2] : memref<8x128xf32, #tpu.memory_space<vmem>>, vector<8x128xf32>
    %c0_3 = arith.constant 0 : index
    %c0_4 = arith.constant 0 : index
    %2 = vector.load %arg2[%c0_3, %c0_4] : memref<128x128xf32, #tpu.memory_space<vmem>>, vector<128x128xf32>
    %cst = arith.constant dense<0.000000e+00> : vector<8x128xf32>
    %3 = tpu.matmul %1, %2, %cst {dimension_numbers = #tpu.dot_dimension_numbers<[1], [0], [0], [1], [0, 0, 1, 1], [], []>} : vector<8x128xf32>, vector<128x128xf32>, vector<8x128xf32> -> vector<8x128xf32>
    %4 = vector.extract_strided_slice %0 {offsets = [0, 0], sizes = [1, 128], strides = [1, 1]} : vector<8x128xf32> to vector<1x128xf32>
    %5 = vector.broadcast %4 : vector<1x128xf32> to vector<8x128xf32>
    %6 = arith.addf %3, %5 : vector<8x128xf32>
    %cst_5 = arith.constant 0.000000e+00 : f32
    %7 = vector.broadcast %cst_5 : f32 to vector<8x128xf32>
    %8 = arith.maximumf %6, %7 : vector<8x128xf32>
    %9 = vector.extract_strided_slice %0 {offsets = [1, 0], sizes = [1, 128], strides = [1, 1]} : vector<8x128xf32> to vector<1x128xf32>
    %10 = vector.extract_strided_slice %0 {offsets = [2, 0], sizes = [1, 128], strides = [1, 1]} : vector<8x128xf32> to vector<1x128xf32>
    %cst_6 = arith.constant dense<0.000000e+00> : vector<128xf32>
    %11 = vector.multi_reduction <add>, %8, %cst_6 [0] : vector<8x128xf32> to vector<128xf32>
    %12 = vector.shape_cast %11 : vector<128xf32> to vector<1x128xf32>
    %cst_7 = arith.constant 1.250000e-01 : f32
    %13 = vector.broadcast %cst_7 : f32 to vector<1x128xf32>
    %14 = arith.mulf %12, %13 : vector<1x128xf32>
    %15 = vector.broadcast %14 : vector<1x128xf32> to vector<8x128xf32>
    %16 = arith.subf %8, %15 : vector<8x128xf32>
    %17 = arith.mulf %16, %16 : vector<8x128xf32>
    %cst_8 = arith.constant dense<0.000000e+00> : vector<128xf32>
    %18 = vector.multi_reduction <add>, %17, %cst_8 [0] : vector<8x128xf32> to vector<128xf32>
    %19 = vector.shape_cast %18 : vector<128xf32> to vector<1x128xf32>
    %cst_9 = arith.constant 1.250000e-01 : f32
    %20 = vector.broadcast %cst_9 : f32 to vector<1x128xf32>
    %21 = arith.mulf %19, %20 : vector<1x128xf32>
    %cst_10 = arith.constant 9.99999974E-6 : f32
    %22 = vector.broadcast %cst_10 : f32 to vector<1x128xf32>
    %23 = arith.addf %21, %22 : vector<1x128xf32>
    %24 = math.rsqrt %23 : vector<1x128xf32>
    %25 = arith.mulf %9, %24 : vector<1x128xf32>
    %26 = vector.broadcast %25 : vector<1x128xf32> to vector<8x128xf32>
    %27 = arith.mulf %16, %26 : vector<8x128xf32>
    %28 = vector.broadcast %10 : vector<1x128xf32> to vector<8x128xf32>
    %29 = arith.addf %27, %28 : vector<8x128xf32>
    %c0_11 = arith.constant 0 : index
    %c0_12 = arith.constant 0 : index
    %30 = vector.load %arg1[%c0_11, %c0_12] : memref<8x128xf32, #tpu.memory_space<vmem>>, vector<8x128xf32>
    %c0_13 = arith.constant 0 : index
    %c0_14 = arith.constant 0 : index
    %31 = vector.load %arg4[%c0_13, %c0_14] : memref<128x128xf32, #tpu.memory_space<vmem>>, vector<128x128xf32>
    %cst_15 = arith.constant dense<0.000000e+00> : vector<8x128xf32>
    %32 = tpu.matmul %30, %31, %cst_15 {dimension_numbers = #tpu.dot_dimension_numbers<[1], [0], [0], [1], [0, 0, 1, 1], [], []>} : vector<8x128xf32>, vector<128x128xf32>, vector<8x128xf32> -> vector<8x128xf32>
    %33 = arith.addf %29, %32 : vector<8x128xf32>
    %34 = vector.extract_strided_slice %0 {offsets = [6, 0], sizes = [1, 128], strides = [1, 1]} : vector<8x128xf32> to vector<1x128xf32>
    %35 = vector.broadcast %34 : vector<1x128xf32> to vector<8x128xf32>
    %36 = arith.addf %33, %35 : vector<8x128xf32>
    %c0_16 = arith.constant 0 : index
    %c0_17 = arith.constant 0 : index
    %37 = vector.load %arg3[%c0_16, %c0_17] : memref<128x128xf32, #tpu.memory_space<vmem>>, vector<128x128xf32>
    %cst_18 = arith.constant dense<0.000000e+00> : vector<8x128xf32>
    %38 = tpu.matmul %36, %37, %cst_18 {dimension_numbers = #tpu.dot_dimension_numbers<[1], [0], [0], [1], [0, 0, 1, 1], [], []>} : vector<8x128xf32>, vector<128x128xf32>, vector<8x128xf32> -> vector<8x128xf32>
    %39 = vector.extract_strided_slice %0 {offsets = [3, 0], sizes = [1, 128], strides = [1, 1]} : vector<8x128xf32> to vector<1x128xf32>
    %40 = vector.broadcast %39 : vector<1x128xf32> to vector<8x128xf32>
    %41 = arith.addf %38, %40 : vector<8x128xf32>
    %cst_19 = arith.constant 0.000000e+00 : f32
    %42 = vector.broadcast %cst_19 : f32 to vector<8x128xf32>
    %43 = arith.maximumf %41, %42 : vector<8x128xf32>
    %44 = vector.extract_strided_slice %0 {offsets = [4, 0], sizes = [1, 128], strides = [1, 1]} : vector<8x128xf32> to vector<1x128xf32>
    %45 = vector.extract_strided_slice %0 {offsets = [5, 0], sizes = [1, 128], strides = [1, 1]} : vector<8x128xf32> to vector<1x128xf32>
    %cst_20 = arith.constant dense<0.000000e+00> : vector<128xf32>
    %46 = vector.multi_reduction <add>, %43, %cst_20 [0] : vector<8x128xf32> to vector<128xf32>
    %47 = vector.shape_cast %46 : vector<128xf32> to vector<1x128xf32>
    %cst_21 = arith.constant 1.250000e-01 : f32
    %48 = vector.broadcast %cst_21 : f32 to vector<1x128xf32>
    %49 = arith.mulf %47, %48 : vector<1x128xf32>
    %50 = vector.broadcast %49 : vector<1x128xf32> to vector<8x128xf32>
    %51 = arith.subf %43, %50 : vector<8x128xf32>
    %52 = arith.mulf %51, %51 : vector<8x128xf32>
    %cst_22 = arith.constant dense<0.000000e+00> : vector<128xf32>
    %53 = vector.multi_reduction <add>, %52, %cst_22 [0] : vector<8x128xf32> to vector<128xf32>
    %54 = vector.shape_cast %53 : vector<128xf32> to vector<1x128xf32>
    %cst_23 = arith.constant 1.250000e-01 : f32
    %55 = vector.broadcast %cst_23 : f32 to vector<1x128xf32>
    %56 = arith.mulf %54, %55 : vector<1x128xf32>
    %cst_24 = arith.constant 9.99999974E-6 : f32
    %57 = vector.broadcast %cst_24 : f32 to vector<1x128xf32>
    %58 = arith.addf %56, %57 : vector<1x128xf32>
    %59 = math.rsqrt %58 : vector<1x128xf32>
    %60 = arith.mulf %44, %59 : vector<1x128xf32>
    %61 = vector.broadcast %60 : vector<1x128xf32> to vector<8x128xf32>
    %62 = arith.mulf %51, %61 : vector<8x128xf32>
    %63 = vector.broadcast %45 : vector<1x128xf32> to vector<8x128xf32>
    %64 = arith.addf %62, %63 : vector<8x128xf32>
    %c0_25 = arith.constant 0 : index
    %c0_26 = arith.constant 0 : index
    %65 = vector.load %arg6[%c0_25, %c0_26] : memref<8x128xf32, #tpu.memory_space<vmem>>, vector<8x128xf32>
    tpu.vector_store %arg6[%c0_25, %c0_26], %64 {strides = array<i32>} : memref<8x128xf32, #tpu.memory_space<vmem>>, vector<8x128xf32>,
    return
  }
}

</mosaic_0001>

<bundles_post_ra>
// kernel: tpu_custom_call.1
= control target key start
LH: loop header
LB: loop body
LE: loop exit
PB: predicated region body
PF: predicated region fallthrough
CT: control target
= control target key end

     0   :  { %11 = vsyncpa [#allocation3], 0  ;;  %s580_s0 = inlined_call_operand.hbm [shape: f32[8,128], index: 0, kind: input, shape index: {}]   ;;  %s581_s1 = inlined_call_operand.hbm [shape: f32[8,128], index: 1, kind: input, shape index: {}]   ;;  %s582_s2 = inlined_call_operand.hbm [shape: f32[128,128], index: 2, kind: input, shape index: {}]   ;;  %s583_s3 = inlined_call_operand.hbm [shape: f32[128,128], index: 3, kind: input, shape index: {}]   ;;  %s584_s4 = inlined_call_operand.hbm [shape: f32[128,128], index: 4, kind: input, shape index: {}]   ;;  %s585_s5 = inlined_call_operand.hbm [shape: f32[8,128], index: 5, kind: input, shape index: {}]   ;;  %s586_s6 = inlined_call_operand.hbm [shape: f32[8,128], index: 6, kind: output, shape index: {}]  }
   0x1   :  { %12 = vsyncpa [#allocation6], 0 }
   0x2   :  { %13 = vsyncpa [#allocation9], 0 }
   0x3   :  { %14 = vsyncpa [#allocation12], 0  ;;  %s32_s23 = sshll.u32 %s581_s1, 4  ;;  %s33_s23 = int_to_ptr.hbm [resolvable:$true] %s32_s23 }
   0x4   :  { %15 = vsyncpa [#allocation4], 0  ;;  %s506_s24 = smov [#allocation5]   ;;  %s55_s28 = sshll.u32 %s583_s3, 4  ;;  %s56_s28 = int_to_ptr.hbm [resolvable:$true] %s55_s28 }
   0x5   :  { %s34_s25 = sshll.u32 %s506_s24, 4  ;;  %s507_s29 = smov [#allocation8]   ;;  %s35_s25 = int_to_ptr.vmem [resolvable:$true] %s34_s25 }
   0x6   :  { %37 = dma.hbm_to_vmem [thread:$0]  %s33_s23, 128, %s35_s25, [#allocation6]  }
   0x7   :  { %s57_s30 = sshll.u32 %s507_s29, 4  ;;  %s21_s9 = sshll.u32 %s580_s0, 4  ;;  %s58_s30 = int_to_ptr.vmem [resolvable:$true] %s57_s30  ;;  %s22_s9 = int_to_ptr.hbm [resolvable:$true] %s21_s9 }
   0x8   :  { %s508_s1 = smov 128   ;;  %s509_s10 = smov 8  }
   0x9   :  { %63 = dma.hbm_to_vmem [thread:$0]  %s56_s28, 2048, %s58_s30, [#allocation9], %s508_s1, %s508_s1, %s509_s10  }
   0xa   :  { %s42_s13 = sshll.u32 %s582_s2, 4  ;;  %s510_s14 = smov [#allocation2]   ;;  %s43_s13 = int_to_ptr.hbm [resolvable:$true] %s42_s13 }
   0xb   :  { %s23_s15 = sshll.u32 %s510_s14, 4  ;;  %s511_s3 = smov [#allocation7]   ;;  %s24_s15 = int_to_ptr.vmem [resolvable:$true] %s23_s15 }
   0xc   :  { %26 = dma.hbm_to_vmem [thread:$0]  %s22_s9, 128, %s24_s15, [#allocation3]  }
   0xd   :  { %s44_s16 = sshll.u32 %s511_s3, 4  ;;  %s68_s0 = sshll.u32 %s584_s4, 4  ;;  %s45_s16 = int_to_ptr.vmem [resolvable:$true] %s44_s16  ;;  %s69_s0 = int_to_ptr.hbm [resolvable:$true] %s68_s0 }
   0xe   :  { %50 = dma.hbm_to_vmem [thread:$0]  %s43_s13, 2048, %s45_s16, [#allocation6], %s508_s1, %s508_s1, %s509_s10  }
   0xf   :  { %s82_s21 = sshll.u32 %s585_s5, 4  ;;  %s512_s22 = smov [#allocation10]   ;;  %s83_s21 = int_to_ptr.hbm [resolvable:$true] %s82_s21 }
  0x10   :  { %s70_s2 = sshll.u32 %s512_s22, 4  ;;  %s513_s23 = smov [#allocation11]   ;;  %s71_s2 = int_to_ptr.vmem [resolvable:$true] %s70_s2 }
  0x11   :  { %76 = dma.hbm_to_vmem [thread:$0]  %s69_s0, 2048, %s71_s2, [#allocation9], %s508_s1, %s508_s1, %s509_s10  }
  0x12   :  { %s84_s24 = sshll.u32 %s513_s23, 4  ;;  %s85_s24 = int_to_ptr.vmem [resolvable:$true] %s84_s24 }
  0x13   :  { %87 = dma.hbm_to_vmem [thread:$0]  %s83_s21, 128, %s85_s24, [#allocation12]  }
  0x14   :  { %496 = dma.done.wait [#allocation3], 128  }
  0x15   :  { %497 = vsyncadd [#allocation3], 4294967168 }
  0x16   :  { %498 = dma.done.wait [#allocation6], 2176  }
  0x17   :  { %499 = vsyncadd [#allocation6], 4294965120 }
  0x18   :  { %500 = dma.done.wait [#allocation9], 4096  }
  0x19   :  { %501 = vsyncadd [#allocation9], 4294963200 }
  0x1a   :  { %502 = dma.done.wait [#allocation12], 128  }
  0x1b   :  { %503 = vsyncadd [#allocation12], 4294967168  ;;  %v129_v0 = vld [vmem:[#allocation7 + $0x78] sm:$0xff]  ;;  %v128_v1 = vld [vmem:[#allocation7 + $0x70] sm:$0xff]  ;;  %s514_s4 = smov [#allocation13]   ;;  %s302_s27 = sshll.u32 %s586_s6, 4  ;;  %s303_s27 = int_to_ptr.hbm [resolvable:$true] %s302_s27 }
  0x1c   :  { %131 = vmatpush.msra.mxu0 %v129_v0  ;;  %v127_v2 = vld [vmem:[#allocation7 + $0x68] sm:$0xff]  ;;  %v126_v3 = vld [vmem:[#allocation7 + $0x60] sm:$0xff]  ;;  %v200_v4 = vld [vmem:[#allocation10 + $0x78] sm:$0xff]  ;;  %s300_s5 = sshll.u32 %s514_s4, 4  ;;  %s301_s5 = int_to_ptr.vmem [resolvable:$true] %s300_s5 }
  0x1d   :  { %v125_v5 = vld [vmem:[#allocation7 + $0x58] sm:$0xff]  ;;  %201 = vmatpush.msra.mxu1 %v200_v4  ;;  %v199_v6 = vld [vmem:[#allocation10 + $0x70] sm:$0xff]  ;;  %v198_v7 = vld [vmem:[#allocation10 + $0x68] sm:$0xff] }
  0x1e   :  { %132 = vmatpush.msra.mxu0 %v128_v1  ;;  %v124_v8 = vld [vmem:[#allocation7 + $0x50] sm:$0xff]  ;;  %v197_v9 = vld [vmem:[#allocation10 + $0x60] sm:$0xff]  ;;  %v123_v10 = vld [vmem:[#allocation7 + $0x48] sm:$0xff] }
  0x1f   :  { %202 = vmatpush.msra.mxu1 %v199_v6  ;;  %v196_v11 = vld [vmem:[#allocation10 + $0x58] sm:$0xff]  ;;  %v122_v12 = vld [vmem:[#allocation7 + $0x40] sm:$0xff]  ;;  %v195_v13 = vld [vmem:[#allocation10 + $0x50] sm:$0xff] }
  0x20   :  { %133 = vmatpush.msra.mxu0 %v127_v2  ;;  %v121_v14 = vld [vmem:[#allocation7 + $0x38] sm:$0xff]  ;;  %v194_v15 = vld [vmem:[#allocation10 + $0x48] sm:$0xff]  ;;  %v120_v16 = vld [vmem:[#allocation7 + $0x30] sm:$0xff] }
  0x21   :  { %203 = vmatpush.msra.mxu1 %v198_v7  ;;  %v193_v17 = vld [vmem:[#allocation10 + $0x40] sm:$0xff]  ;;  %v119_v18 = vld [vmem:[#allocation7 + $0x28] sm:$0xff]  ;;  %v192_v19 = vld [vmem:[#allocation10 + $0x38] sm:$0xff] }
  0x22   :  { %134 = vmatpush.msra.mxu0 %v126_v3  ;;  %v118_v20 = vld [vmem:[#allocation7 + $0x20] sm:$0xff]  ;;  %v191_v21 = vld [vmem:[#allocation10 + $0x30] sm:$0xff]  ;;  %v117_v22 = vld [vmem:[#allocation7 + $0x18] sm:$0xff] }
  0x23   :  { %204 = vmatpush.msra.mxu1 %v197_v9  ;;  %v190_v23 = vld [vmem:[#allocation10 + $0x28] sm:$0xff]  ;;  %v116_v24 = vld [vmem:[#allocation7 + $0x10] sm:$0xff]  ;;  %v189_v25 = vld [vmem:[#allocation10 + $0x20] sm:$0xff] }
  0x24   :  { %135 = vmatpush.msra.mxu0 %v125_v5  ;;  %v115_v26 = vld [vmem:[#allocation7 + $0x8] sm:$0xff]  ;;  %v188_v27 = vld [vmem:[#allocation10 + $0x18] sm:$0xff]  ;;  %v114_v28 = vld [vmem:[#allocation7] sm:$0xff] }
  0x25   :  { %205 = vmatpush.msra.mxu1 %v196_v11  ;;  %v113_v29 = vld [vmem:[#allocation2] sm:$0xff]  ;;  %v186_v31 = vld [vmem:[#allocation10 + $0x8] sm:$0xff]  ;;  %v185_v32 = vld [vmem:[#allocation10] sm:$0xff] }
  0x26   :  { %136 = vmatpush.msra.mxu0 %v124_v8  ;;  %v187_v30 = vld [vmem:[#allocation10 + $0x10] sm:$0xff]  ;;  %v184_v33 = vld [vmem:[#allocation5] sm:$0xff]  ;;  %v568_v34 = vld [vmem:[#allocation11] sm:$0xff] }
  0x27   :  { %206 = vmatpush.msra.mxu1 %v195_v13  ;;  %v130_v35 = vperm.slane %v568_v34, 0  ;;  %v239_v40 = vld [vmem:[#allocation8 + $0x78] sm:$0xff]  ;;  %v238_v42 = vld [vmem:[#allocation8 + $0x70] sm:$0xff]  ;;  %v237_v43 = vld [vmem:[#allocation8 + $0x68] sm:$0xff] }
  0x28   :  { %137 = vmatpush.msra.mxu0 %v123_v10  ;;  %241 = vmatpush.msra.mxu2 %v239_v40  ;;  %v236_v45 = vld [vmem:[#allocation8 + $0x60] sm:$0xff]  ;;  %v235_v47 = vld [vmem:[#allocation8 + $0x58] sm:$0xff]  ;;  %v234_v49 = vld [vmem:[#allocation8 + $0x50] sm:$0xff] }
  0x29   :  { %207 = vmatpush.msra.mxu1 %v194_v15  ;;  %v233_v51 = vld [vmem:[#allocation8 + $0x48] sm:$0xff]  ;;  %v232_v53 = vld [vmem:[#allocation8 + $0x40] sm:$0xff]  ;;  %v231_v55 = vld [vmem:[#allocation8 + $0x38] sm:$0xff] }
  0x2a   :  { %138 = vmatpush.msra.mxu0 %v122_v12  ;;  %242 = vmatpush.msra.mxu2 %v238_v42  ;;  %v230_v57 = vld [vmem:[#allocation8 + $0x30] sm:$0xff]  ;;  %v229_v59 = vld [vmem:[#allocation8 + $0x28] sm:$0xff]  ;;  %v228_v61 = vld [vmem:[#allocation8 + $0x20] sm:$0xff] }
  0x2b   :  { %208 = vmatpush.msra.mxu1 %v193_v17  ;;  %v227_v63 = vld [vmem:[#allocation8 + $0x18] sm:$0xff]  ;;  %v226_v2 = vld [vmem:[#allocation8 + $0x10] sm:$0xff]  ;;  %v225_v4 = vld [vmem:[#allocation8 + $0x8] sm:$0xff]  ;;  %v182_v17 = vperm.slane %v568_v34, 2 }
  0x2c   :  { %139 = vmatpush.msra.mxu0 %v121_v14  ;;  %243 = vmatpush.msra.mxu2 %v237_v43  ;;  %v224_v5 = vld [vmem:[#allocation8] sm:$0xff] }
  0x2d   :  { %209 = vmatpush.msra.mxu1 %v192_v19 }
  0x2e   :  { %140 = vmatpush.msra.mxu0 %v120_v16  ;;  %244 = vmatpush.msra.mxu2 %v236_v45 }
  0x2f   :  { %210 = vmatpush.msra.mxu1 %v191_v21  ;;  %v222_v21 = vperm.slane %v568_v34, 6 }
  0x30   :  { %141 = vmatpush.msra.mxu0 %v119_v18  ;;  %245 = vmatpush.msra.mxu2 %v235_v47 }
  0x31   :  { %211 = vmatpush.msra.mxu1 %v190_v23 }
  0x32   :  { %142 = vmatpush.msra.mxu0 %v118_v20  ;;  %246 = vmatpush.msra.mxu2 %v234_v49 }
  0x33   :  { %212 = vmatpush.msra.mxu1 %v189_v25 }
  0x34   :  { %143 = vmatpush.msra.mxu0 %v117_v22  ;;  %247 = vmatpush.msra.mxu2 %v233_v51 }
  0x35   :  { %213 = vmatpush.msra.mxu1 %v188_v27 }
  0x36   :  { %144 = vmatpush.msra.mxu0 %v116_v24  ;;  %248 = vmatpush.msra.mxu2 %v232_v53  ;;  %v240_v24 = vperm.slane %v568_v34, 3 }
  0x37   :  { %214 = vmatpush.msra.mxu1 %v187_v30 }
  0x38   :  { %145 = vmatpush.msra.mxu0 %v115_v26  ;;  %249 = vmatpush.msra.mxu2 %v231_v55  ;;  %v292_v55 = vperm.slane %v568_v34, 5 }
  0x39   :  { %215 = vmatpush.msra.mxu1 %v186_v31 }
  0x3a   :  { %146 = vmatpush.msra.mxu0 %v114_v28  ;;  %250 = vmatpush.msra.mxu2 %v230_v57 }
  0x3b   :  { %147 = vmatmul.f32.vlgmr.msra.gmra.mxu0 %v113_v29  ;;  %216 = vmatpush.msra.mxu1 %v185_v32 }
  0x3c   :  { %217 = vmatmul.f32.vlgmr.msra.gmra.mxu1 %v184_v33  ;;  %251 = vmatpush.msra.mxu2 %v229_v59 }
  0x3e   :  { %252 = vmatpush.msra.mxu2 %v228_v61 }
  0x40   :  { %253 = vmatpush.msra.mxu2 %v227_v63 }
  0x42   :  { %254 = vmatpush.msra.mxu2 %v226_v2 }
  0x44   :  { %255 = vmatpush.msra.mxu2 %v225_v4 }
  0x46   :  { %256 = vmatpush.msra.mxu2 %v224_v5 }
  0xb8   :  { %v148_v36 = vpop.f32.mrf.mxu0 }
  0xb9   :  { %v149_v37 = vadd.f32 %v148_v36, %v130_v35  ;;  %v218_v19 = vpop.f32.mrf.mxu1 }
  0xbb   :  { %v151_v38 = vmax.f32 %v149_v37, 0.0 }
  0xbd   :  { %v152_v39 = vrot.slane %v151_v38, 4 }
  0xbf   :  { %v153_v41 = vadd.f32 %v152_v39, %v151_v38 }
  0xc1   :  { %v154_v44 = vrot.slane %v153_v41, 2 }
  0xc3   :  { %v155_v46 = vadd.f32 %v154_v44, %v153_v41 }
  0xc5   :  { %v156_v48 = vrot.slane %v155_v46, 1 }
  0xc7   :  { %v157_v50 = vadd.f32 %v156_v48, %v155_v46 }
  0xc9   :  { %v158_v52 = vmul.f32 0.125, %v157_v50 }
  0xcb   :  { %v159_v54 = vsub.f32 %v151_v38, %v158_v52 }
  0xcd   :  { %v160_v56 = vmul.f32 %v159_v54, %v159_v54 }
  0xcf   :  { %v161_v58 = vrot.slane %v160_v56, 4 }
  0xd1   :  { %v162_v60 = vadd.f32 %v161_v58, %v160_v56 }
  0xd3   :  { %v163_v62 = vrot.slane %v162_v60, 2 }
  0xd5   :  { %v164_v0 = vadd.f32 %v163_v62, %v162_v60 }
  0xd7   :  { %v165_v1 = vrot.slane %v164_v0, 1 }
  0xd9   :  { %v166_v3 = vadd.f32 %v165_v1, %v164_v0 }
  0xdb   :  { %v167_v6 = vmul.f32 0.125, %v166_v3 }
  0xdd   :  { %v168_v7 = vadd.f32 1e-05, %v167_v6 }
  0xdf   :  { %324 = vrsqrt.f32 %v168_v7  ;;  %vm175_vm1 = vweird.f32 %v168_v7 }
  0xe5   :  { %v325_v8 = vpop.eup %324 }
  0xe6   :  { %v170_v9 = vmul.f32 %v325_v8, %v168_v7  ;;  %vm176_vm0 = vweird.f32 %v325_v8 }
  0xe7   :  { %vm177_vm2 = vmor %vm175_vm1, %vm176_vm0 }
  0xe8   :  { %v171_v10 = vmul.f32 %v325_v8, %v170_v9 }
  0xea   :  { %v172_v11 = vmul.f32 0.5, %v171_v10 }
  0xec   :  { %v173_v12 = vsub.f32 1.5, %v172_v11 }
  0xee   :  { %v174_v13 = vmul.f32 %v325_v8, %v173_v12 }
  0xf0   :  { %v178_v14 = vsel %vm177_vm2, %v325_v8, %v174_v13 }
  0xf1   :  { %v179_v15 = vmul.f32 %v178_v14, %v568_v34 }
  0xf3   :  { %v180_v16 = vperm.slane %v179_v15, 1 }
  0xf5   :  { %v181_v18 = vmul.f32 %v180_v16, %v159_v54 }
  0xf7   :  { %v183_v20 = vadd.f32 %v182_v17, %v181_v18 }
  0xf9   :  { %v221_v22 = vadd.f32 %v218_v19, %v183_v20 }
  0xfb   :  { %v223_v23 = vadd.f32 %v222_v21, %v221_v22 }
  0xfd   :  { %257 = vmatmul.f32.vlgmr.msra.gmra.mxu2 %v223_v23 }
 0x180   :  { %v258_v25 = vpop.f32.mrf.mxu2 }
 0x181   :  { %v259_v26 = vadd.f32 %v258_v25, %v240_v24 }
 0x183   :  { %v261_v27 = vmax.f32 %v259_v26, 0.0 }
 0x185   :  { %v262_v28 = vrot.slane %v261_v27, 4 }
 0x187   :  { %v263_v29 = vadd.f32 %v262_v28, %v261_v27 }
 0x189   :  { %v264_v30 = vrot.slane %v263_v29, 2 }
 0x18b   :  { %v265_v31 = vadd.f32 %v264_v30, %v263_v29 }
 0x18d   :  { %v266_v32 = vrot.slane %v265_v31, 1 }
 0x18f   :  { %v267_v33 = vadd.f32 %v266_v32, %v265_v31 }
 0x191   :  { %v268_v35 = vmul.f32 0.125, %v267_v33 }
 0x193   :  { %v269_v36 = vsub.f32 %v261_v27, %v268_v35 }
 0x195   :  { %v270_v37 = vmul.f32 %v269_v36, %v269_v36 }
 0x197   :  { %v271_v38 = vrot.slane %v270_v37, 4 }
 0x199   :  { %v272_v39 = vadd.f32 %v271_v38, %v270_v37 }
 0x19b   :  { %v273_v40 = vrot.slane %v272_v39, 2 }
 0x19d   :  { %v274_v41 = vadd.f32 %v273_v40, %v272_v39 }
 0x19f   :  { %v275_v42 = vrot.slane %v274_v41, 1 }
 0x1a1   :  { %v276_v43 = vadd.f32 %v275_v42, %v274_v41 }
 0x1a3   :  { %v277_v44 = vmul.f32 0.125, %v276_v43 }
 0x1a5   :  { %v278_v45 = vadd.f32 1e-05, %v277_v44 }
 0x1a7   :  { %326 = vrsqrt.f32 %v278_v45  ;;  %vm285_vm4 = vweird.f32 %v278_v45 }
 0x1ad   :  { %v327_v46 = vpop.eup %326 }
 0x1ae   :  { %v280_v47 = vmul.f32 %v327_v46, %v278_v45  ;;  %vm286_vm3 = vweird.f32 %v327_v46 }
 0x1af   :  { %vm287_vm5 = vmor %vm285_vm4, %vm286_vm3 }
 0x1b0   :  { %v281_v48 = vmul.f32 %v327_v46, %v280_v47 }
 0x1b2   :  { %v282_v49 = vmul.f32 0.5, %v281_v48 }
 0x1b4   :  { %v283_v50 = vsub.f32 1.5, %v282_v49 }
 0x1b6   :  { %v284_v51 = vmul.f32 %v327_v46, %v283_v50 }
 0x1b8   :  { %v288_v52 = vsel %vm287_vm5, %v327_v46, %v284_v51 }
 0x1b9   :  { %v289_v53 = vmul.f32 %v288_v52, %v568_v34 }
 0x1bb   :  { %v290_v54 = vperm.slane %v289_v53, 4 }
 0x1bd   :  { %v291_v56 = vmul.f32 %v290_v54, %v269_v36 }
 0x1bf   :  { %v293_v57 = vadd.f32 %v292_v55, %v291_v56 }
 0x1c1   :  { %294 = vst [vmem:[#allocation13] sm:$0xff] %v293_v57 }
 0x1c2   :  { %305 = dma.vmem_to_hbm [thread:$0]  %s301_s5, 128, %s303_s27, [#allocation4]  }
 0x1c3   :  { %504 = dma.done.wait [#allocation4], 128  }
 0x1c4   :  { %505 = vsyncadd [#allocation4], 4294967168 }
 0x1c5   :  { %310 = vsyncpa [#allocation3], 1 }
 0x1c6   :  { %311 = vsyncpa [#allocation6], 1 }
 0x1c7   :  { %312 = vsyncpa [#allocation9], 1 }
 0x1c8   :  { %313 = vsyncpa [#allocation12], 1 }
 0x1c9   :  { %314 = vsyncpa [#allocation4], 1 }

</bundles_post_ra>
